<compile_context>
chip_gen: v7x
topology: tpu7x:2x2x1
jax: 0.10.0
libtpu: 0.0.40
codegen_flags: <defaults>
</compile_context>

<pallas_src>
import jax
import jax.numpy as jnp
from jax.experimental import pallas as pl
from jax.experimental.pallas import tpu as pltpu


V_CHUNK = 128  # lanes per vocab chunk in the caption kernel (256 also fine on v6e/v7x)


# --------------------------------------------------------------------------
# Kernel 1: image projection (K-tiled over Din) + L2 norm + vocab scores.
# Grid: (din_pad // tk,), reduction axis -> "arbitrary".
# --------------------------------------------------------------------------
def proj_scores_kernel(x_ref, w_ref, tab_ref, scores_ref, acc_ref):
    """x_ref   : [B_pad, tk]    bf16 flattened-image K-slice
       w_ref   : [tk, E]        bf16 stand-in encoder-projection K-slice
       tab_ref : [E, V_pad]     bf16 packed (noun|rel|noun) table, transposed
       scores_ref : [B_pad, V_pad] f32 output: <feat_norm[b], table_row_v>
       acc_ref : [B_pad, E]     f32 VMEM accumulator (persists across K steps)
    """
    k = pl.program_id(0)

    @pl.when(k == 0)
    def _init():
        acc_ref[...] = jnp.zeros_like(acc_ref)

    # bf16 x bf16 matmul, f32 accumulation on the MXU.
    acc_ref[...] += jnp.dot(x_ref[...], w_ref[...],
                            preferred_element_type=jnp.float32)

    @pl.when(k == pl.num_programs(0) - 1)
    def _finalize():
        feat = acc_ref[...]                                           # [B, E] f32
        inv_norm = jax.lax.rsqrt(
            jnp.sum(feat * feat, axis=-1, keepdims=True) + 1e-12)     # [B, 1]
        feat_n = (feat * inv_norm).astype(jnp.bfloat16)               # [B, E] bf16
        # One full-width MXU matmul against the packed table, done once.
        scores_ref[...] = jnp.dot(feat_n, tab_ref[...],
                                  preferred_element_type=jnp.float32)  # [B, V_pad]


# --------------------------------------------------------------------------
# Kernel 2: caption scoring = 3-element gather from the score matrix.
# Grid: (nc_pad // tile_nc,), independent caption tiles -> "parallel".
# --------------------------------------------------------------------------
def caption_kernel(scores_ref, s_ref, r_ref, o_ref, dots_ref):
    """scores_ref : [B_pad, V_pad]    f32 (grid-constant, tiny)
       s/r/o_ref  : [B_pad, TILE_NC]  int32 vocab-shifted ids (-1 = padding)
       dots_ref   : [B_pad, TILE_NC]  f32 output similarity scores
    dots[b, c] = scores[b, s] + scores[b, r] + scores[b, o], because the
    packed table is block-structured so those three scores are exactly
    feat . concat(n[s], r[rel], n[o]).
    """
    b, tc = dots_ref.shape
    v_pad = scores_ref.shape[1]

    s = s_ref[...][:, :, None]          # [B, TC, 1]
    r = r_ref[...][:, :, None]
    o = o_ref[...][:, :, None]

    dots = jnp.zeros((b, tc), jnp.float32)
    # Chunk the vocab axis so the multi-hot selector is only ever
    # [B, TC, V_CHUNK] (bounded VMEM, unmasked 128-lane vregs).  Static Python
    # loop: chunk count is a trace-time constant (1 at toy scale).
    for ci in range(v_pad // V_CHUNK):
        off = ci * V_CHUNK
        sc = scores_ref[:, off:off + V_CHUNK]                          # [B, VC]
        lane = jax.lax.broadcasted_iota(jnp.int32, (b, tc, V_CHUNK), 2) + off
        # Padded captions / batch rows carry id -1 and never match -> zero row.
        mh = ((lane == s) | (lane == r) | (lane == o)).astype(jnp.float32)
        dots = dots + jnp.sum(sc[:, None, :] * mh, axis=-1)            # [B, TC]

    dots_ref[...] = dots


# --------------------------------------------------------------------------
# Wrapper
# --------------------------------------------------------------------------
def cat_rel_forward(batch_img, img_labels, w_enc, n_table, r_table,
                    *, tk=256, max_tile_nc=512):
    """batch_img : [B, C, H, W] f32
       img_labels: [B, NC, 3] int32 (subj, rel, obj) indices
       w_enc     : [C*H*W, E] stand-in image-encoder projection
       n_table   : [noun_num, 100]       (nn.Embedding(noun_num, 100))
       r_table   : [rel_num, E - 200]    (nn.Embedding(reln_num, emb_dim-200))
    """
    B, C, H, W = batch_img.shape
    din = C * H * W
    emb = w_enc.shape[1]
    nc = img_labels.shape[1]
    noun_num, dn = n_table.shape
    rel_num, dr = r_table.shape
    assert dn + dr + dn == emb, "tables must concatenate to emb_dim"

    # Padding: batch -> 16 sublanes (bf16 packing), Din -> K-tile multiple,
    # vocab and captions -> lane-dense multiples of 128.
    b_pad = -(-B // 16) * 16
    din_pad = -(-din // tk) * tk
    v = noun_num + rel_num + noun_num
    v_pad = -(-v // V_CHUNK) * V_CHUNK
    nc_pad = -(-nc // 128) * 128
    tile_nc = min(max_tile_nc, nc_pad)          # collapses to 1 tile at toy NC

    # bf16 MXU inputs (f32 accumulation happens in-kernel).
    x_flat = batch_img.reshape(B, din).astype(jnp.bfloat16)
    x_flat = jnp.pad(x_flat, ((0, b_pad - B), (0, din_pad - din)))
    w_bf16 = jnp.pad(w_enc.astype(jnp.bfloat16), ((0, din_pad - din), (0, 0)))

    # Pack the (noun | rel | noun) tables into one block-structured table so
    # that scores[b, shifted_id] == feat[b] . the corresponding 100/312/100
    # slice of feat against the embedding row.  Padded vocab rows are zero and
    # are never selected (ids < v).  Stored bf16, transposed to [E, V_pad].
    tab = jnp.zeros((v_pad, emb), jnp.float32)
    tab = tab.at[:noun_num, :dn].set(n_table)
    tab = tab.at[noun_num:noun_num + rel_num, dn:dn + dr].set(r_table)
    tab = tab.at[noun_num + rel_num:v, dn + dr:].set(n_table)
    tab_t = tab.T.astype(jnp.bfloat16)                                 # [E, V_pad]

    # Vocab-shifted label ids, padded with -1 (never matches a lane index).
    def pad_idx(a):
        return jnp.pad(a.astype(jnp.int32),
                       ((0, b_pad - B), (0, nc_pad - nc)),
                       constant_values=-1)

    s_idx = pad_idx(img_labels[:, :, 0])
    r_idx = pad_idx(img_labels[:, :, 1] + noun_num)
    o_idx = pad_idx(img_labels[:, :, 2] + noun_num + rel_num)

    # ---- Call 1: projection + norm + vocab scores (runs once). -----------
    scores = pl.pallas_call(
        proj_scores_kernel,
        out_shape=jax.ShapeDtypeStruct((b_pad, v_pad), jnp.float32),
        grid=(din_pad // tk,),
        in_specs=[
            pl.BlockSpec((b_pad, tk), lambda k: (0, k)),     # x K-slice
            pl.BlockSpec((tk, emb), lambda k: (k, 0)),       # w_enc K-slice
            pl.BlockSpec((emb, v_pad), lambda k: (0, 0)),    # packed table (resident)
        ],
        out_specs=pl.BlockSpec((b_pad, v_pad), lambda k: (0, 0)),
        scratch_shapes=[pltpu.VMEM((b_pad, emb), jnp.float32)],
        compiler_params=pltpu.CompilerParams(
            dimension_semantics=("arbitrary",),              # K reduction
            vmem_limit_bytes=32 * 1024 * 1024),
    )(x_flat, w_bf16, tab_t)

    # ---- Call 2: per-caption 3-element gather over the score matrix. -----
    dots_pad = pl.pallas_call(
        caption_kernel,
        out_shape=jax.ShapeDtypeStruct((b_pad, nc_pad), jnp.float32),
        grid=(nc_pad // tile_nc,),
        in_specs=[
            pl.BlockSpec((b_pad, v_pad), lambda j: (0, 0)),      # scores (tiny, resident)
            pl.BlockSpec((b_pad, tile_nc), lambda j: (0, j)),    # subj ids
            pl.BlockSpec((b_pad, tile_nc), lambda j: (0, j)),    # rel ids
            pl.BlockSpec((b_pad, tile_nc), lambda j: (0, j)),    # obj ids
        ],
        out_specs=pl.BlockSpec((b_pad, tile_nc), lambda j: (0, j)),
        compiler_params=pltpu.CompilerParams(
            dimension_semantics=("parallel",)),
    )(scores, s_idx, r_idx, o_idx)

    return dots_pad[:B, :nc]


if __name__ == "__main__":
    # Small, CatRelModel-consistent shapes.
    B, C, H, W = 2, 3, 16, 16          # batch of NCHW images
    EMB = 512                          # config.emb_dim
    NC = 8                             # num_captions per image
    NOUN_NUM, REL_NUM = 32, 16         # vocab sizes from nountoi / reltoi

    key = jax.random.PRNGKey(0)
    ks = jax.random.split(key, 8)

    batch_img = jax.random.normal(ks[0], (B, C, H, W), jnp.float32)
    # Deterministic stand-in parameters.
    w_enc = 0.02 * jax.random.normal(ks[1], (C * H * W, EMB), jnp.float32)
    n_table = jax.random.normal(ks[2], (NOUN_NUM, 100), jnp.float32)       # nn.Embedding(noun_num, 100)
    r_table = jax.random.normal(ks[3], (REL_NUM, EMB - 200), jnp.float32)  # nn.Embedding(reln_num, emb_dim-200)

    # (subj, rel, obj) index triples per caption, i.e. img_labels [B, NC, 3].
    subj = jax.random.randint(ks[4], (B, NC, 1), 0, NOUN_NUM, jnp.int32)
    rel = jax.random.randint(ks[5], (B, NC, 1), 0, REL_NUM, jnp.int32)
    obj = jax.random.randint(ks[6], (B, NC, 1), 0, NOUN_NUM, jnp.int32)
    img_labels = jnp.concatenate([subj, rel, obj], axis=-1)

    dots = cat_rel_forward(batch_img, img_labels, w_enc, n_table, r_table)
    dots = jax.block_until_ready(dots)
    assert dots.shape == (B, NC), dots.shape

    # Pure-JAX reference with the same bf16 roundings as the kernel
    # (x, w, normalized feat, embedding table), so only accumulation order /
    # the rsqrt-eps normalization path differ.
    x32 = batch_img.reshape(B, -1).astype(jnp.bfloat16).astype(jnp.float32)
    w32 = w_enc.astype(jnp.bfloat16).astype(jnp.float32)
    feat = x32 @ w32
    feat = feat / jnp.linalg.norm(feat, axis=-1, keepdims=True)
    feat = feat.astype(jnp.bfloat16).astype(jnp.float32)
    n32 = n_table.astype(jnp.bfloat16).astype(jnp.float32)
    r32 = r_table.astype(jnp.bfloat16).astype(jnp.float32)
    tgt_ref = jnp.concatenate(
        [n32[img_labels[:, :, 0]],
         r32[img_labels[:, :, 1]],
         n32[img_labels[:, :, 2]]], axis=-1)
    ref = jnp.einsum("be,bce->bc", feat, tgt_ref)
    assert jnp.allclose(dots, ref, atol=5e-3, rtol=5e-3), (dots, ref)

    print("KERNEL_OK")
</pallas_src>

<mosaic_0001>
module attributes {stable_mosaic.version = 11 : i64} {
  func.func @proj_scores_kernel(%arg0: i32, %arg1: memref<16x256xbf16, #tpu.memory_space<vmem>>, %arg2: memref<256x512xbf16, #tpu.memory_space<vmem>>, %arg3: memref<512x128xbf16, #tpu.memory_space<vmem>>, %arg4: memref<16x128xf32, #tpu.memory_space<vmem>>, %arg5: memref<16x512xf32, #tpu.memory_space<vmem>>) attributes {dimension_semantics = [#tpu.dimension_semantics<arbitrary>], iteration_bounds = array<i64: 3>, scalar_prefetch = 0 : i64, scratch_operands = 1 : i64, tpu.core_type = #tpu.core_type<tc>, window_params = [{transform_indices = @transform_0, window_bounds = array<i64: 16, 256>}, {transform_indices = @transform_1, window_bounds = array<i64: 256, 512>}, {pipeline_mode = #tpu.pipeline_mode<synchronous>, transform_indices = @transform_2, window_bounds = array<i64: 512, 128>}, {pipeline_mode = #tpu.pipeline_mode<synchronous>, transform_indices = @transform_3, window_bounds = array<i64: 16, 128>}]} {
    %c0_i32 = arith.constant 0 : i32
    %0 = arith.cmpi eq, %arg0, %c0_i32 : i32
    %1 = arith.extui %0 : i1 to i32
    %c0_i32_0 = arith.constant 0 : i32
    %2 = arith.cmpi ne, %1, %c0_i32_0 : i32
    scf.if %2 {
      %cst_9 = arith.constant 0.000000e+00 : f32
      %12 = vector.broadcast %cst_9 : f32 to vector<16x512xf32>
      %c0_10 = arith.constant 0 : index
      %c0_11 = arith.constant 0 : index
      %13 = vector.load %arg5[%c0_10, %c0_11] : memref<16x512xf32, #tpu.memory_space<vmem>>, vector<16x512xf32>
      tpu.vector_store %arg5[%c0_10, %c0_11], %12 {strides = array<i32>} : memref<16x512xf32, #tpu.memory_space<vmem>>, vector<16x512xf32>,
    } else {
    }
    %c0 = arith.constant 0 : index
    %c0_1 = arith.constant 0 : index
    %3 = vector.load %arg5[%c0, %c0_1] : memref<16x512xf32, #tpu.memory_space<vmem>>, vector<16x512xf32>
    %c0_2 = arith.constant 0 : index
    %c0_3 = arith.constant 0 : index
    %4 = vector.load %arg1[%c0_2, %c0_3] : memref<16x256xbf16, #tpu.memory_space<vmem>>, vector<16x256xbf16>
    %c0_4 = arith.constant 0 : index
    %c0_5 = arith.constant 0 : index
    %5 = vector.load %arg2[%c0_4, %c0_5] : memref<256x512xbf16, #tpu.memory_space<vmem>>, vector<256x512xbf16>
    %cst = arith.constant dense<0.000000e+00> : vector<16x512xf32>
    %6 = tpu.matmul %4, %5, %cst {dimension_numbers = #tpu.dot_dimension_numbers<[1], [0], [0], [1], [0, 0, 1, 1], [], []>} : vector<16x256xbf16>, vector<256x512xbf16>, vector<16x512xf32> -> vector<16x512xf32>
    %7 = arith.addf %3, %6 : vector<16x512xf32>
    %c0_6 = arith.constant 0 : index
    %c0_7 = arith.constant 0 : index
    %8 = vector.load %arg5[%c0_6, %c0_7] : memref<16x512xf32, #tpu.memory_space<vmem>>, vector<16x512xf32>
    tpu.vector_store %arg5[%c0_6, %c0_7], %7 {strides = array<i32>} : memref<16x512xf32, #tpu.memory_space<vmem>>, vector<16x512xf32>,
    %c2_i32 = arith.constant 2 : i32
    %9 = arith.cmpi eq, %arg0, %c2_i32 : i32
    %10 = arith.extui %9 : i1 to i32
    %c0_i32_8 = arith.constant 0 : i32
    %11 = arith.cmpi ne, %10, %c0_i32_8 : i32
    scf.if %11 {
      %c0_9 = arith.constant 0 : index
      %c0_10 = arith.constant 0 : index
      %12 = vector.load %arg5[%c0_9, %c0_10] : memref<16x512xf32, #tpu.memory_space<vmem>>, vector<16x512xf32>
      %13 = arith.mulf %12, %12 : vector<16x512xf32>
      %cst_11 = arith.constant dense<0.000000e+00> : vector<16xf32>
      %14 = vector.multi_reduction <add>, %13, %cst_11 [1] : vector<16x512xf32> to vector<16xf32>
      %15 = vector.shape_cast %14 : vector<16xf32> to vector<16x1xf32>
      %cst_12 = arith.constant 9.99999996E-13 : f32
      %16 = vector.broadcast %cst_12 : f32 to vector<16x1xf32>
      %17 = arith.addf %15, %16 : vector<16x1xf32>
      %18 = math.rsqrt %17 : vector<16x1xf32>
      %19 = vector.broadcast %18 : vector<16x1xf32> to vector<16x512xf32>
      %20 = arith.mulf %12, %19 : vector<16x512xf32>
      %21 = arith.truncf %20 : vector<16x512xf32> to vector<16x512xbf16>
      %c0_13 = arith.constant 0 : index
      %c0_14 = arith.constant 0 : index
      %22 = vector.load %arg3[%c0_13, %c0_14] : memref<512x128xbf16, #tpu.memory_space<vmem>>, vector<512x128xbf16>
      %cst_15 = arith.constant dense<0.000000e+00> : vector<16x128xf32>
      %23 = tpu.matmul %21, %22, %cst_15 {dimension_numbers = #tpu.dot_dimension_numbers<[1], [0], [0], [1], [0, 0, 1, 1], [], []>} : vector<16x512xbf16>, vector<512x128xbf16>, vector<16x128xf32> -> vector<16x128xf32>
      %c0_16 = arith.constant 0 : index
      %c0_17 = arith.constant 0 : index
      %24 = vector.load %arg4[%c0_16, %c0_17] : memref<16x128xf32, #tpu.memory_space<vmem>>, vector<16x128xf32>
      tpu.vector_store %arg4[%c0_16, %c0_17], %23 {strides = array<i32>} : memref<16x128xf32, #tpu.memory_space<vmem>>, vector<16x128xf32>,
    } else {
    }
    return
  }
  func.func @transform_0(%arg0: i32) -> (i32, i32) {
    %c0_i32 = arith.constant 0 : i32
    %c0_i32_0 = arith.constant 0 : i32
    return %c0_i32, %arg0 : i32, i32
  }
  func.func @transform_1(%arg0: i32) -> (i32, i32) {
    %c0_i32 = arith.constant 0 : i32
    %c0_i32_0 = arith.constant 0 : i32
    return %arg0, %c0_i32 : i32, i32
  }
  func.func @transform_2(%arg0: i32) -> (i32, i32) {
    %c0_i32 = arith.constant 0 : i32
    %c0_i32_0 = arith.constant 0 : i32
    %c0_i32_1 = arith.constant 0 : i32
    return %c0_i32, %c0_i32_0 : i32, i32
  }
  func.func @transform_3(%arg0: i32) -> (i32, i32) {
    %c0_i32 = arith.constant 0 : i32
    %c0_i32_0 = arith.constant 0 : i32
    %c0_i32_1 = arith.constant 0 : i32
    return %c0_i32, %c0_i32_0 : i32, i32
  }
}

</mosaic_0001>

<bundles_post_ra>
// kernel: tpu_custom_call.1
= control target key start
LH: loop header
LB: loop body
LE: loop exit
PB: predicated region body
PF: predicated region fallthrough
CT: control target
= control target key end

     0   :  { %8 = vsyncpa [#allocation4], 0  ;;  %s2123_s0 = inlined_call_operand.hbm [shape: bf16[16,768], index: 0, kind: input, shape index: {}]   ;;  %s2124_s1 = inlined_call_operand.hbm [shape: bf16[768,512], index: 1, kind: input, shape index: {}]   ;;  %s2125_s2 = inlined_call_operand.hbm [shape: bf16[512,128], index: 2, kind: input, shape index: {}]   ;;  %s2126_s3 = inlined_call_operand.hbm [shape: f32[16,128], index: 3, kind: output, shape index: {}]  }
   0x1   :  { %10 = vsyncpa [#allocation4 + $0x1], 0 }
   0x2   :  { %11 = vsyncpa [#allocation7], 0 }
   0x3   :  { %13 = vsyncpa [#allocation7 + $0x1], 0 }
   0x4   :  { %14 = vsyncpa [#allocation5], 0  ;;  %s1799_s12 = smov 0   ;;  %s1801_s13 = smov 0  }
   0x5   :  { %s1803_s14 = smov 0   ;;  %s1805_s15 = smov 0  }
   0x6 LB: > { %s1818_s16 = sadd.s32 4294967295, %s1763_s15   ;;  %s1821_s17 = sadd.s32 1, %s1763_s15   ;;  %s1763_s15 = sphi %s1805_s15, %s2145_s15   ;;  %s1759_s14 = sphi %s1803_s14, %s2144_s14   ;;  %s1755_s13 = sphi %s1801_s13, %s2143_s13   ;;  %s1751_s12 = sphi %s1799_s12, %s2142_s12  }
   0x7   : > { %s24_s18 = ssub.s32 %s1763_s15, %s1821_s17  ;;  %s27_s19 = sadd.s32 1, %s1759_s14 }
   0x8   : > { %p25_p0 = scmp.eq.s32.totalorder %s24_s18, 0  ;;  %p34_p1 = scmp.ne.s32.totalorder %s1759_s14, %s1755_s13 }
   0x9   : > { %p35_p2 = scmp.eq.s32.totalorder %s1763_s15, 0  ;;  %p40_p3 = scmp.ne.s32.totalorder %s1755_s13, %s1751_s12 }
   0xa   : > { %s1831_s20 = scalar_select %p25_p0, %s1759_s14, %s27_s19  }
   0xb   : > { %p1833_p4 = por %p35_p2, %p34_p1  ;;  %p2127_p5 = scmp.eq.s32.totalorder %s1818_s16, 0 }
   0xc   : > { %p1231_p6 = scmp.ge.s32.totalorder %s1763_s15, 1  ;;  %p119_p7 = scmp.lt.s32.totalorder %s1763_s15, 4 }
   0xd   : > { %p1842_p8 = por %p2127_p5, %p40_p3  ;;  %s1765_s24 = smov [#allocation8]  }
   0xe   : > { %p1847_p10 = pnand %p1231_p6, %p119_p7  ;;  %s131_s25 = sshll.u32 %s1765_s24, 4  ;;  %s132_s25 = int_to_ptr.vmem [resolvable:$true] %s131_s25 }
   0xf   : > { %s2132_s22 = scalar_select %p1842_p8, 1, 0 }
  0x10   : > { %s2133_s23 = scalar_select %p1847_p10, 1, 0 }
  0x11   : > { %p1408_p11 = pneg %p1847_p10  ;;  %p1420_p13 = scmp.lt.s32.totalorder %s1763_s15, 3 }
  0x12   : > { %s1861_s27 = sand.u32 1, %s1759_s14   ;;  %s1349_s28 = sshll.u32 %s1763_s15, 7 }
  0x13   : > { %p1855_p12 = pnand %p1408_p11, %p2127_p5  ;;  %p1866_p0 = pnand %p1420_p13, %p1833_p4 }
  0x14   : > { %s1603_s5 = scalar_lea.hbm %s2125_s2, 4096 }
  0x15   : > { %s2135_s29 = scalar_select %p1866_p0, 1, 0 }
  0x16   : > { %p1604_p1 = scmp.ne.s32.totalorder %s2125_s2, %s1603_s5  ;;  %p1605_p2 = pneg %p1855_p12 }
  0x17   : > { %p1610_p7 = scmp.lt.u32.totalorder %s1603_s5, %s2125_s2 }
  0x18   : > { %p1606_p3 = pnand %p1605_p2, %p1604_p1 }
  0x1a   : > { %p1607_p6 = pneg %p1606_p3 }
  0x1c   : > { %p1612_p4 = pnand %p1610_p7, %p1607_p6 }
  0x1e   : > { %1615 = shalt.err (!%p1612_p4)
}
  0x1f   : > { %s1616_s10 = scalar_lea.vmem %s132_s25, 4096  ;;  %p1624_p5 = scmp.lt.s32.totalorder %s132_s25, %s132_s25 }
  0x20   : > { %p1617_p11 = scmp.ne.s32.totalorder %s132_s25, %s1616_s10  ;;  %p1625_p8 = scmp.lt.s32.totalorder %s1616_s10, %s1616_s10 }
  0x22   : > { %p1619_p13 = pnand %p1617_p11, %p1605_p2  ;;  %p1626_p10 = por %p1625_p8, %p1624_p5 }
  0x24   : > { %p1620_p9 = pneg %p1619_p13 }
  0x26   : > { %p1627_p0 = pnand %p1626_p10, %p1620_p9 }
  0x28   : > { %1630 = shalt.err (!%p1627_p0)
}
  0x29   : > { %s1766_s11 = smov 64   ;;  %s1767_s12 = smov 4  }
  0x2a   : > { %1411 = dma.hbm_to_vmem [thread:$0]  (!%p1855_p12), %s2125_s2, 4096, %s132_s25, [#allocation7], %s1766_s11, %s1766_s11, %s1767_s12  }
  0x2b   : > { %s1234_s21 = sshll.u32 %s1861_s27, 4  ;;  %s1890_s4 = scalar_lea.hbm %s2123_s0, %s1349_s28 }
  0x2c   : > { %s149_s5 = scalar_lea.vmem [#allocation3], %s1234_s21  ;;  %s146_s7 = scalar_lea.sflag [#allocation4], %s1861_s27 }
  0x2d   : > { %s156_s6 = sshll.u32 %s149_s5, 4  ;;  %s1631_s26 = scalar_lea.hbm %s1890_s4, 256  ;;  %s1892_s6 = int_to_ptr.vmem [resolvable:$true] %s156_s6 }
  0x2e   : > { %p1632_p5 = scmp.ne.s32.totalorder %s1890_s4, %s1631_s26  ;;  %p2136_p8 = scmp.ne.s32.totalorder %s2135_s29, 0 }
  0x2f   : > { %s1636_s8 = scalar_lea.hbm %s2123_s0, 768  ;;  %p1637_p0 = scmp.lt.u32.totalorder %s1890_s4, %s2123_s0 }
  0x30   : > { %p1633_p9 = pneg %p2136_p8  ;;  %p1638_p1 = scmp.lt.u32.totalorder %s1636_s8, %s1631_s26 }
  0x31   : > { %p1640_p3 = scmp.lt.u32.totalorder %s1631_s26, %s1890_s4 }
  0x32   : > { %p1634_p10 = pnand %p1633_p9, %p1632_p5  ;;  %p1639_p2 = por %p1638_p1, %p1637_p0 }
  0x34   : > { %p1635_p12 = pneg %p1634_p10  ;;  %p1641_p6 = por %p1640_p3, %p1639_p2 }
  0x36   : > { %p1642_p7 = pnand %p1641_p6, %p1635_p12 }
  0x38   : > { %1645 = shalt.err (!%p1642_p7)
}
  0x39   : > { %s1646_s11 = scalar_lea.vmem %s1892_s6, 256  ;;  %s1768_s12 = smov [#allocation3]  }
  0x3a   : > { %p1647_p4 = scmp.ne.s32.totalorder %s1892_s6, %s1646_s11  ;;  %s1651_s18 = sshll.u32 %s1768_s12, 4  ;;  %s1652_s18 = int_to_ptr.vmem [resolvable:$false] %s1651_s18 }
  0x3b   : > { %s1653_s19 = scalar_lea.vmem %s1652_s18, 512  ;;  %p1654_p5 = scmp.lt.s32.totalorder %s1892_s6, %s1652_s18 }
  0x3c   : > { %p1649_p11 = pnand %p1647_p4, %p1633_p9  ;;  %p1655_p10 = scmp.lt.s32.totalorder %s1653_s19, %s1646_s11 }
  0x3e   : > { %p1650_p13 = pneg %p1649_p11  ;;  %p1656_p0 = por %p1655_p10, %p1654_p5 }
  0x40   : > { %p1657_p1 = pnand %p1656_p0, %p1650_p13 }
  0x42   : > { %1660 = shalt.err (!%p1657_p1)
}
  0x43   : > { %s1769_s21 = smov 384   ;;  %s1770_s24 = smov 128  }
  0x44   : > { %s1771_s30 = smov 8   ;;  %s166_s5 = sand.u32 1, %s1763_s15  }
  0x45   : > { %1415 = dma.hbm_to_vmem [thread:$0]  (!%p2136_p8), %s1890_s4, 256, %s1892_s6, %s146_s7, %s1769_s21, %s1770_s24, %s1771_s30  }
  0x46   : > { %s1237_s26 = sshll.u32 %s1861_s27, 9  ;;  %s1351_s25 = sshll.u32 %s1763_s15, 13 }
  0x47   : > { %s170_s28 = scalar_lea.vmem [#allocation6], %s1237_s26  ;;  %s1928_s11 = scalar_lea.hbm %s2124_s1, %s1351_s25 }
  0x48   : > { %s178_s8 = sshll.u32 %s170_s28, 4  ;;  %s1932_s12 = scalar_lea.sflag [#allocation7], %s166_s5  ;;  %s1930_s8 = int_to_ptr.vmem [resolvable:$true] %s178_s8 }
  0x49   : > { %s1661_s18 = scalar_lea.hbm %s1928_s11, 8192  ;;  %s1666_s4 = scalar_lea.hbm %s2124_s1, 24576 }
  0x4a   : > { %p1662_p12 = scmp.ne.s32.totalorder %s1928_s11, %s1661_s18  ;;  %p1667_p6 = scmp.lt.u32.totalorder %s1928_s11, %s2124_s1 }
  0x4b   : > { %p1668_p7 = scmp.lt.u32.totalorder %s1666_s4, %s1661_s18  ;;  %p1670_p11 = scmp.lt.u32.totalorder %s1661_s18, %s1928_s11 }
  0x4c   : > { %p1664_p2 = pnand %p1662_p12, %p1633_p9 }
  0x4d   : > { %p1669_p4 = por %p1668_p7, %p1667_p6 }
  0x4e   : > { %p1665_p3 = pneg %p1664_p2 }
  0x4f   : > { %p1671_p13 = por %p1670_p11, %p1669_p4 }
  0x51   : > { %p1672_p5 = pnand %p1671_p13, %p1665_p3 }
  0x53   : > { %1675 = shalt.err (!%p1672_p5)
}
  0x54   : > { %s1676_s19 = scalar_lea.vmem %s1930_s8, 8192  ;;  %s1772_s21 = smov [#allocation6]  }
  0x55   : > { %p1677_p10 = scmp.ne.s32.totalorder %s1930_s8, %s1676_s19  ;;  %s1681_s24 = sshll.u32 %s1772_s21, 4  ;;  %s1682_s24 = int_to_ptr.vmem [resolvable:$false] %s1681_s24 }
  0x56   : > { %s1683_s30 = scalar_lea.vmem %s1682_s24, 16384  ;;  %p1684_p12 = scmp.lt.s32.totalorder %s1930_s8, %s1682_s24 }
  0x57   : > { %p1679_p0 = pnand %p1677_p10, %p1633_p9  ;;  %p1685_p2 = scmp.lt.s32.totalorder %s1683_s30, %s1676_s19 }
  0x59   : > { %p1680_p1 = pneg %p1679_p0  ;;  %p1686_p6 = por %p1685_p2, %p1684_p12 }
  0x5b   : > { %p1687_p7 = pnand %p1686_p6, %p1680_p1 }
  0x5d   : > { %1690 = shalt.err (!%p1687_p7)
}
  0x5e   : > { %s1773_s5 = smov 256   ;;  %s1774_s26 = smov 16  }
  0x5f   : > { %1418 = dma.hbm_to_vmem [thread:$0]  (!%p2136_p8), %s1928_s11, 8192, %s1930_s8, %s1932_s12, %s1773_s5, %s1773_s5, %s1774_s26  }
  0x60   : > { %p2137_p9 = scmp.ne.s32.totalorder %s2133_s23, 0 }
  0x61   : > { %s192_s25 = sand.u32 (!%p2137_p9), 1, %s1755_s13   ;;  %p2138_p3 = scmp.ne.s32.totalorder (!%p2137_p9), %s2132_s22, 0 }
  0x62   : > { %190 = sbr.rel (%p2137_p9) target bundleno = 827 (0x33b), region = 32  ;;  %s1242_s28 = sshll.u32 (!%p2137_p9), %s192_s25, 4 }
  0x63   : > { %s193_s9 = scalar_lea.sflag (!%p2137_p9), [#allocation4], %s192_s25  ;;  %s1961_s10 = scalar_lea.vmem (!%p2137_p9), [#allocation3], %s1242_s28 }
  0x69   : > { %1734 = dma.done.wait (%p2138_p3), %s193_s9, 256  }
  0x6a   : > { %1736 = vsyncadd (%p2138_p3), %s193_s9, 4294967040  ;;  %s201_s18 = sand.u32 1, %s1818_s16   ;;  %s1243_s29 = sshll.u32 %s192_s25, 9 }
  0x6b   : > { %s202_s8 = scalar_lea.sflag [#allocation7], %s201_s18  ;;  %s1968_s11 = scalar_lea.vmem [#allocation6], %s1243_s29 }
  0x6c   : > { %1738 = dma.done.wait (%p2138_p3), %s202_s8, 8192  }
  0x6d   : > { %1740 = vsyncadd (%p2138_p3), %s202_s8, 4294959104  ;;  %p2139_p8 = scmp.eq.s32.totalorder %s1818_s16, 0 }
  0x6f   : > { %1742 = dma.done.wait (%p2139_p8), [#allocation7], 4096   ;;  %p2140_p4 = pmov %p2139_p8 }
  0x70   : > { %p2141_p11 = scmp.ne.s32.totalorder %s1818_s16, 0 }
  0x71   : > { %1744 = vsyncadd (%p2140_p4), [#allocation7], 4294963200  ;;  %v1775_v0 = vmov (!%p2141_p11), 0.0  }
  0x72   : > { %238 = sbr.rel (%p2141_p11) target bundleno = 121 (0x79), region = 48  ;;  %239 = vst [vmem:[#allocation2] sm:$0xff] (!%p2141_p11), %v1775_v0  ;;  %240 = vst [vmem:[#allocation2 + $0x8] sm:$0xff] (!%p2141_p11), %v1775_v0 }
  0x73   : > { %241 = vst [vmem:[#allocation2 + $0x10] sm:$0xff] (!%p2141_p11), %v1775_v0  ;;  %242 = vst [vmem:[#allocation2 + $0x18] sm:$0xff] (!%p2141_p11), %v1775_v0 }
  0x74   : > { %243 = vst [vmem:[#allocation2 + $0x20] sm:$0xff] (!%p2141_p11), %v1775_v0  ;;  %244 = vst [vmem:[#allocation2 + $0x28] sm:$0xff] (!%p2141_p11), %v1775_v0 }
  0x75   : > { %245 = vst [vmem:[#allocation2 + $0x30] sm:$0xff] (!%p2141_p11), %v1775_v0  ;;  %246 = vst [vmem:[#allocation2 + $0x38] sm:$0xff] (!%p2141_p11), %v1775_v0 }
  0x79 PF: > { %v1468_v1 = vld [vmem:[%s1968_s11 + $0x4] ss:$16 sps:$4 sm:$0xff]   ;;  %v1470_v2 = vld [vmem:[%s1968_s11 + $0xc] ss:$16 sps:$4 sm:$0xff]   ;;  %v1472_v3 = vld [vmem:[%s1968_s11] ss:$16 sps:$4 sm:$0xff]  }
  0x7a   : > { %651 = vmatprep.subr.bf16.mxu0 %v1468_v1  ;;  %v1473_v4 = vld [vmem:[%s1968_s11 + $0x8] ss:$16 sps:$4 sm:$0xff]   ;;  %694 = vmatprep.subr.bf16.mxu1 %v1470_v2  ;;  %v1474_v5 = vld [vmem:[%s1968_s11 + $0x24] ss:$16 sps:$4 sm:$0xff]   ;;  %v1476_v6 = vld [vmem:[%s1968_s11 + $0x2c] ss:$16 sps:$4 sm:$0xff]  }
  0x7b   : > { %652 = vmatpush1.bf16.msra.mxu0 %v1472_v3  ;;  %695 = vmatpush1.bf16.msra.mxu1 %v1473_v4  ;;  %v1478_v7 = vld [vmem:[%s1968_s11 + $0x20] ss:$16 sps:$4 sm:$0xff]   ;;  %v1479_v8 = vld [vmem:[%s1968_s11 + $0x28] ss:$16 sps:$4 sm:$0xff]   ;;  %v1480_v9 = vld [vmem:[%s1968_s11 + $0x44] ss:$16 sps:$4 sm:$0xff]  }
  0x7c   : > { %653 = vmatprep.subr.bf16.mxu0 %v1474_v5  ;;  %696 = vmatprep.subr.bf16.mxu1 %v1476_v6  ;;  %v1482_v10 = vld [vmem:[%s1968_s11 + $0x4c] ss:$16 sps:$4 sm:$0xff]   ;;  %v1484_v11 = vld [vmem:[%s1968_s11 + $0x40] ss:$16 sps:$4 sm:$0xff]   ;;  %v1485_v12 = vld [vmem:[%s1968_s11 + $0x48] ss:$16 sps:$4 sm:$0xff]  }
  0x7d   : > { %v1486_v13 = vld [vmem:[%s1968_s11 + $0x64] ss:$16 sps:$4 sm:$0xff]   ;;  %v1488_v14 = vld [vmem:[%s1968_s11 + $0x6c] ss:$16 sps:$4 sm:$0xff]   ;;  %v1490_v15 = vld [vmem:[%s1968_s11 + $0x60] ss:$16 sps:$4 sm:$0xff]  }
  0x7e   : > { %v1491_v16 = vld [vmem:[%s1968_s11 + $0x68] ss:$16 sps:$4 sm:$0xff]   ;;  %v1492_v17 = vld [vmem:[%s1968_s11 + $0x84] ss:$16 sps:$4 sm:$0xff]   ;;  %v1494_v18 = vld [vmem:[%s1968_s11 + $0x8c] ss:$16 sps:$4 sm:$0xff]  }
  0x7f   : > { %654 = vmatpush1.bf16.msra.mxu0 %v1478_v7  ;;  %697 = vmatpush1.bf16.msra.mxu1 %v1479_v8  ;;  %v1496_v19 = vld [vmem:[%s1968_s11 + $0x80] ss:$16 sps:$4 sm:$0xff]   ;;  %v1497_v20 = vld [vmem:[%s1968_s11 + $0x88] ss:$16 sps:$4 sm:$0xff]   ;;  %v1498_v21 = vld [vmem:[%s1968_s11 + $0xa4] ss:$16 sps:$4 sm:$0xff]  }
  0x80   : > { %655 = vmatprep.subr.bf16.mxu0 %v1480_v9  ;;  %698 = vmatprep.subr.bf16.mxu1 %v1482_v10  ;;  %v1500_v22 = vld [vmem:[%s1968_s11 + $0xac] ss:$16 sps:$4 sm:$0xff]   ;;  %v1502_v23 = vld [vmem:[%s1968_s11 + $0xa0] ss:$16 sps:$4 sm:$0xff]   ;;  %v1503_v24 = vld [vmem:[%s1968_s11 + $0xa8] ss:$16 sps:$4 sm:$0xff]  }
  0x81   : > { %v1504_v25 = vld [vmem:[%s1968_s11 + $0xc4] ss:$16 sps:$4 sm:$0xff]   ;;  %v1506_v26 = vld [vmem:[%s1968_s11 + $0xcc] ss:$16 sps:$4 sm:$0xff]   ;;  %v1508_v27 = vld [vmem:[%s1968_s11 + $0xc0] ss:$16 sps:$4 sm:$0xff]  }
  0x82   : > { %v1509_v28 = vld [vmem:[%s1968_s11 + $0xc8] ss:$16 sps:$4 sm:$0xff]   ;;  %v1510_v29 = vld [vmem:[%s1968_s11 + $0xe4] ss:$16 sps:$4 sm:$0xff]   ;;  %v1512_v30 = vld [vmem:[%s1968_s11 + $0xec] ss:$16 sps:$4 sm:$0xff]  }
  0x83   : > { %656 = vmatpush1.bf16.msra.mxu0 %v1484_v11  ;;  %699 = vmatpush1.bf16.msra.mxu1 %v1485_v12  ;;  %v1514_v31 = vld [vmem:[%s1968_s11 + $0xe0] ss:$16 sps:$4 sm:$0xff]   ;;  %v1515_v32 = vld [vmem:[%s1968_s11 + $0xe8] ss:$16 sps:$4 sm:$0xff]   ;;  %v1516_v33 = vld [vmem:[%s1968_s11 + $0x104] ss:$16 sps:$4 sm:$0xff]  }
  0x84   : > { %657 = vmatprep.subr.bf16.mxu0 %v1486_v13  ;;  %700 = vmatprep.subr.bf16.mxu1 %v1488_v14  ;;  %v1518_v34 = vld [vmem:[%s1968_s11 + $0x10c] ss:$16 sps:$4 sm:$0xff]   ;;  %v1520_v35 = vld [vmem:[%s1968_s11 + $0x100] ss:$16 sps:$4 sm:$0xff]   ;;  %v1521_v36 = vld [vmem:[%s1968_s11 + $0x108] ss:$16 sps:$4 sm:$0xff]  }
  0x85   : > { %v1522_v37 = vld [vmem:[%s1968_s11 + $0x124] ss:$16 sps:$4 sm:$0xff]   ;;  %v1524_v38 = vld [vmem:[%s1968_s11 + $0x12c] ss:$16 sps:$4 sm:$0xff]   ;;  %v1526_v39 = vld [vmem:[%s1968_s11 + $0x120] ss:$16 sps:$4 sm:$0xff]  }
  0x86   : > { %v1527_v40 = vld [vmem:[%s1968_s11 + $0x128] ss:$16 sps:$4 sm:$0xff]   ;;  %v1528_v41 = vld [vmem:[%s1968_s11 + $0x144] ss:$16 sps:$4 sm:$0xff]   ;;  %v1530_v42 = vld [vmem:[%s1968_s11 + $0x14c] ss:$16 sps:$4 sm:$0xff]  }
  0x87   : > { %658 = vmatpush1.bf16.msra.mxu0 %v1490_v15  ;;  %701 = vmatpush1.bf16.msra.mxu1 %v1491_v16  ;;  %v1532_v43 = vld [vmem:[%s1968_s11 + $0x140] ss:$16 sps:$4 sm:$0xff]   ;;  %v1533_v44 = vld [vmem:[%s1968_s11 + $0x148] ss:$16 sps:$4 sm:$0xff]   ;;  %v1534_v45 = vld [vmem:[%s1968_s11 + $0x164] ss:$16 sps:$4 sm:$0xff]  }
  0x88   : > { %659 = vmatprep.subr.bf16.mxu0 %v1492_v17  ;;  %702 = vmatprep.subr.bf16.mxu1 %v1494_v18  ;;  %v1536_v46 = vld [vmem:[%s1968_s11 + $0x16c] ss:$16 sps:$4 sm:$0xff]   ;;  %v1538_v48 = vld [vmem:[%s1968_s11 + $0x160] ss:$16 sps:$4 sm:$0xff]   ;;  %v1539_v49 = vld [vmem:[%s1968_s11 + $0x168] ss:$16 sps:$4 sm:$0xff]  }
  0x89   : > { %v1566_v47 = vld [vmem:[%s1961_s10 + $0x4] ss:$8 sps:$4 sm:$0xff]   ;;  %v1544_v52 = vld [vmem:[%s1968_s11 + $0x180] ss:$16 sps:$4 sm:$0xff]   ;;  %v1545_v53 = vld [vmem:[%s1968_s11 + $0x188] ss:$16 sps:$4 sm:$0xff]  }
  0x8a   : > { %v1540_v50 = vld [vmem:[%s1968_s11 + $0x184] ss:$16 sps:$4 sm:$0xff]   ;;  %v1542_v51 = vld [vmem:[%s1968_s11 + $0x18c] ss:$16 sps:$4 sm:$0xff]   ;;  %683 = vmatprep.mubr.bf16.mxu0 %v1566_v47  ;;  %726 = vmatprep.mubr.bf16.mxu1 %v1566_v47  ;;  %v1550_v56 = vld [vmem:[%s1968_s11 + $0x1a0] ss:$16 sps:$4 sm:$0xff]  }
  0x8b   : > { %660 = vmatpush1.bf16.msra.mxu0 %v1496_v19  ;;  %703 = vmatpush1.bf16.msra.mxu1 %v1497_v20  ;;  %v1546_v54 = vld [vmem:[%s1968_s11 + $0x1a4] ss:$16 sps:$4 sm:$0xff]   ;;  %v1548_v55 = vld [vmem:[%s1968_s11 + $0x1ac] ss:$16 sps:$4 sm:$0xff]   ;;  %v1551_v57 = vld [vmem:[%s1968_s11 + $0x1a8] ss:$16 sps:$4 sm:$0xff]  }
  0x8c   : > { %661 = vmatprep.subr.bf16.mxu0 %v1498_v21  ;;  %704 = vmatprep.subr.bf16.mxu1 %v1500_v22  ;;  %v1552_v58 = vld [vmem:[%s1968_s11 + $0x1c4] ss:$16 sps:$4 sm:$0xff]   ;;  %v1554_v59 = vld [vmem:[%s1968_s11 + $0x1cc] ss:$16 sps:$4 sm:$0xff]   ;;  %v1556_v60 = vld [vmem:[%s1968_s11 + $0x1c0] ss:$16 sps:$4 sm:$0xff]  }
  0x8d   : > { %v1557_v61 = vld [vmem:[%s1968_s11 + $0x1c8] ss:$16 sps:$4 sm:$0xff]   ;;  %v1558_v62 = vld [vmem:[%s1968_s11 + $0x1e4] ss:$16 sps:$4 sm:$0xff]   ;;  %v1560_v63 = vld [vmem:[%s1968_s11 + $0x1ec] ss:$16 sps:$4 sm:$0xff]  }
  0x8e   : > { %v1562_v0 = vld [vmem:[%s1968_s11 + $0x1e0] ss:$16 sps:$4 sm:$0xff]   ;;  %v1563_v1 = vld [vmem:[%s1968_s11 + $0x1e8] ss:$16 sps:$4 sm:$0xff]   ;;  %p1312_p13 = scmp.ne.s32.totalorder %s1818_s16, 2 }
  0x8f   : > { %662 = vmatpush1.bf16.msra.mxu0 %v1502_v23  ;;  %705 = vmatpush1.bf16.msra.mxu1 %v1503_v24  ;;  %v1564_v2 = vld [vmem:[%s1961_s10] ss:$8 sps:$4 sm:$0xff]  }
  0x90   : > { %663 = vmatprep.subr.bf16.mxu0 %v1504_v25  ;;  %706 = vmatprep.subr.bf16.mxu1 %v1506_v26  ;;  %v247_v3 = vld [vmem:[#allocation2] sm:$0xff]  ;;  %v249_v4 = vld [vmem:[#allocation2 + $0x10] sm:$0xff]  ;;  %v248_v5 = vld [vmem:[#allocation2 + $0x8] sm:$0xff] }
  0x91   : > { %v250_v6 = vld [vmem:[#allocation2 + $0x18] sm:$0xff]  ;;  %v251_v9 = vld [vmem:[#allocation2 + $0x20] sm:$0xff]  ;;  %v253_v10 = vld [vmem:[#allocation2 + $0x30] sm:$0xff] }
  0x92   : > { %v252_v15 = vld [vmem:[#allocation2 + $0x28] sm:$0xff]  ;;  %v254_v16 = vld [vmem:[#allocation2 + $0x38] sm:$0xff] }
  0x93   : > { %664 = vmatpush1.bf16.msra.mxu0 %v1508_v27  ;;  %707 = vmatpush1.bf16.msra.mxu1 %v1509_v28 }
  0x94   : > { %665 = vmatprep.subr.bf16.mxu0 %v1510_v29  ;;  %708 = vmatprep.subr.bf16.mxu1 %v1512_v30 }
  0x97   : > { %666 = vmatpush1.bf16.msra.mxu0 %v1514_v31  ;;  %709 = vmatpush1.bf16.msra.mxu1 %v1515_v32 }
  0x98   : > { %667 = vmatprep.subr.bf16.mxu0 %v1516_v33  ;;  %710 = vmatprep.subr.bf16.mxu1 %v1518_v34 }
  0x9b   : > { %668 = vmatpush1.bf16.msra.mxu0 %v1520_v35  ;;  %711 = vmatpush1.bf16.msra.mxu1 %v1521_v36 }
  0x9c   : > { %669 = vmatprep.subr.bf16.mxu0 %v1522_v37  ;;  %712 = vmatprep.subr.bf16.mxu1 %v1524_v38 }
  0x9f   : > { %670 = vmatpush1.bf16.msra.mxu0 %v1526_v39  ;;  %713 = vmatpush1.bf16.msra.mxu1 %v1527_v40 }
  0xa0   : > { %671 = vmatprep.subr.bf16.mxu0 %v1528_v41  ;;  %714 = vmatprep.subr.bf16.mxu1 %v1530_v42 }
  0xa3   : > { %672 = vmatpush1.bf16.msra.mxu0 %v1532_v43  ;;  %715 = vmatpush1.bf16.msra.mxu1 %v1533_v44  ;;  %v1567_v43 = vld [vmem:[#allocation8 + $0x40] sm:$0xff] (!%p1312_p13)  }
  0xa4   : > { %673 = vmatprep.subr.bf16.mxu0 %v1534_v45  ;;  %716 = vmatprep.subr.bf16.mxu1 %v1536_v46  ;;  %v1568_v45 = vld [vmem:[#allocation8 + $0xc0] sm:$0xff] (!%p1312_p13)  }
  0xa7   : > { %674 = vmatpush1.bf16.msra.mxu0 %v1538_v48  ;;  %717 = vmatpush1.bf16.msra.mxu1 %v1539_v49  ;;  %v1569_v48 = vld [vmem:[#allocation8] sm:$0xff] (!%p1312_p13)  }
  0xa8   : > { %675 = vmatprep.subr.bf16.mxu0 %v1540_v50  ;;  %718 = vmatprep.subr.bf16.mxu1 %v1542_v51  ;;  %v1570_v50 = vld [vmem:[#allocation8 + $0x80] sm:$0xff] (!%p1312_p13)  }
  0xab   : > { %676 = vmatpush1.bf16.msra.mxu0 %v1544_v52  ;;  %719 = vmatpush1.bf16.msra.mxu1 %v1545_v53  ;;  %v1571_v52 = vld [vmem:[#allocation8 + $0x48] sm:$0xff] (!%p1312_p13)  }
  0xac   : > { %677 = vmatprep.subr.bf16.mxu0 %v1546_v54  ;;  %720 = vmatprep.subr.bf16.mxu1 %v1548_v55  ;;  %v1572_v53 = vld [vmem:[#allocation8 + $0xc8] sm:$0xff] (!%p1312_p13)  }
  0xad   : > { %v1573_v55 = vld [vmem:[#allocation8 + $0x8] sm:$0xff] (!%p1312_p13)  }
  0xaf   : > { %678 = vmatpush1.bf16.msra.mxu0 %v1550_v56  ;;  %721 = vmatpush1.bf16.msra.mxu1 %v1551_v57  ;;  %v1574_v56 = vld [vmem:[#allocation8 + $0x88] sm:$0xff] (!%p1312_p13)   ;;  %v1575_v57 = vld [vmem:[#allocation8 + $0x50] sm:$0xff] (!%p1312_p13)  }
  0xb0   : > { %679 = vmatprep.subr.bf16.mxu0 %v1552_v58  ;;  %722 = vmatprep.subr.bf16.mxu1 %v1554_v59  ;;  %v1576_v58 = vld [vmem:[#allocation8 + $0xd0] sm:$0xff] (!%p1312_p13)  }
  0xb1   : > { %v1577_v59 = vld [vmem:[#allocation8 + $0x10] sm:$0xff] (!%p1312_p13)  }
  0xb3   : > { %680 = vmatpush1.bf16.msra.mxu0 %v1556_v60  ;;  %723 = vmatpush1.bf16.msra.mxu1 %v1557_v61  ;;  %v1578_v60 = vld [vmem:[#allocation8 + $0x90] sm:$0xff] (!%p1312_p13)   ;;  %v1579_v61 = vld [vmem:[#allocation8 + $0x58] sm:$0xff] (!%p1312_p13)  }
  0xb4   : > { %681 = vmatprep.subr.bf16.mxu0 %v1558_v62  ;;  %724 = vmatprep.subr.bf16.mxu1 %v1560_v63  ;;  %v1580_v62 = vld [vmem:[#allocation8 + $0xd8] sm:$0xff] (!%p1312_p13)  }
  0xb5   : > { %v1581_v63 = vld [vmem:[#allocation8 + $0x18] sm:$0xff] (!%p1312_p13)  }
  0xb7   : > { %682 = vmatpush1.bf16.msra.mxu0 %v1562_v0  ;;  %725 = vmatpush1.bf16.msra.mxu1 %v1563_v1  ;;  %v1582_v0 = vld [vmem:[#allocation8 + $0x98] sm:$0xff] (!%p1312_p13)   ;;  %v1583_v1 = vld [vmem:[#allocation8 + $0x60] sm:$0xff] (!%p1312_p13)  }
  0xb8   : > { %1352 = vmatprep.subr.bf16.mxu0 (!%p1312_p13), %v1567_v43  ;;  %1374 = vmatprep.subr.bf16.mxu1 (!%p1312_p13), %v1568_v45 }
  0xba   : > { %684 = vmatmul.mubr.bf16.vlgmr.msra.gmra.mrb[0].mxu0 %v1564_v2  ;;  %727 = vmatmul.mubr.bf16.vlgmr.msra.gmra.mrb[0].mxu1 %v1564_v2  ;;  %v1584_v2 = vld [vmem:[#allocation8 + $0xe0] sm:$0xff] (!%p1312_p13)  }
  0xbb   : > { %1353 = vmatpush3.bf16.msra.mxu0 (!%p1312_p13), %v1569_v48  ;;  %1375 = vmatpush3.bf16.msra.mxu1 (!%p1312_p13), %v1570_v50 }
  0xbc   : > { %1354 = vmatprep.subr.bf16.mxu0 (!%p1312_p13), %v1571_v52  ;;  %1376 = vmatprep.subr.bf16.mxu1 (!%p1312_p13), %v1572_v53 }
  0xbf   : > { %1355 = vmatpush3.bf16.msra.mxu0 (!%p1312_p13), %v1573_v55  ;;  %1377 = vmatpush3.bf16.msra.mxu1 (!%p1312_p13), %v1574_v56 }
  0xc0   : > { %1356 = vmatprep.subr.bf16.mxu0 (!%p1312_p13), %v1575_v57  ;;  %1378 = vmatprep.subr.bf16.mxu1 (!%p1312_p13), %v1576_v58 }
  0xc3   : > { %1357 = vmatpush3.bf16.msra.mxu0 (!%p1312_p13), %v1577_v59  ;;  %1379 = vmatpush3.bf16.msra.mxu1 (!%p1312_p13), %v1578_v60 }
  0xc4   : > { %1358 = vmatprep.subr.bf16.mxu0 (!%p1312_p13), %v1579_v61  ;;  %1380 = vmatprep.subr.bf16.mxu1 (!%p1312_p13), %v1580_v62 }
  0xc7   : > { %1359 = vmatpush3.bf16.msra.mxu0 (!%p1312_p13), %v1581_v63  ;;  %1381 = vmatpush3.bf16.msra.mxu1 (!%p1312_p13), %v1582_v0 }
  0xc8   : > { %1360 = vmatprep.subr.bf16.mxu0 (!%p1312_p13), %v1583_v1  ;;  %1382 = vmatprep.subr.bf16.mxu1 (!%p1312_p13), %v1584_v2 }
 0x18d   : > { %v685_v7 = vpop.f32.mrb[0].mxu0  ;;  %v728_v8 = vpop.f32.mrb[0].mxu1  ;;  %756 = sbr.rel (%p1312_p13) target bundleno = 801 (0x321), region = 52 }
 0x18e   : > { %v737_v11 = vadd.f32 %v685_v7, %v247_v3  ;;  %v739_v12 = vadd.f32 %v728_v8, %v249_v4  ;;  %v687_v13 = vpop.f32.mrb[1].mxu0  ;;  %v730_v14 = vpop.f32.mrb[1].mxu1  ;;  %v1585_v3 = vld [vmem:[#allocation8 + $0x20] sm:$0xff] (!%p1312_p13)   ;;  %v1589_v7 = vld [vmem:[#allocation8 + $0x28] sm:$0xff] (!%p1312_p13)  }
 0x18f   : > { %v738_v17 = vadd.f32 %v687_v13, %v248_v5  ;;  %v740_v18 = vadd.f32 %v730_v14, %v250_v6  ;;  %v689_v19 = vpop.f32.mrb[2].mxu0  ;;  %v732_v20 = vpop.f32.mrb[2].mxu1  ;;  %v1586_v4 = vld [vmem:[#allocation8 + $0xa0] sm:$0xff] (!%p1312_p13)   ;;  %v1587_v5 = vld [vmem:[#allocation8 + $0x68] sm:$0xff] (!%p1312_p13)   ;;  %1361 = vmatpush3.bf16.msra.mxu0 (!%p1312_p13), %v1585_v3  ;;  %v1595_v13 = vld [vmem:[#allocation8 + $0x78] sm:$0xff] (!%p1312_p13)  }
 0x190   : > { %745 = vst [vmem:[#allocation2] sm:$0xff] %v737_v11  ;;  %747 = vst [vmem:[#allocation2 + $0x10] sm:$0xff] %v739_v12  ;;  %v741_v21 = vadd.f32 %v689_v19, %v251_v9  ;;  %v743_v22 = vadd.f32 %v732_v20, %v253_v10  ;;  %v691_v23 = vpop.f32.mrb[3].mxu0  ;;  %v734_v24 = vpop.f32.mrb[3].mxu1  ;;  %v1588_v6 = vld [vmem:[#allocation8 + $0xe8] sm:$0xff] (!%p1312_p13)   ;;  %1383 = vmatpush3.bf16.msra.mxu1 (!%p1312_p13), %v1586_v4  ;;  %1362 = vmatprep.subr.bf16.mxu0 (!%p1312_p13), %v1587_v5  ;;  %v1591_v9 = vld [vmem:[#allocation8 + $0x70] sm:$0xff] (!%p1312_p13)  }
 0x191   : > { %746 = vst [vmem:[#allocation2 + $0x8] sm:$0xff] %v738_v17  ;;  %748 = vst [vmem:[#allocation2 + $0x18] sm:$0xff] %v740_v18  ;;  %v742_v25 = vadd.f32 %v691_v23, %v252_v15  ;;  %v744_v26 = vadd.f32 %v734_v24, %v254_v16  ;;  %v1590_v8 = vld [vmem:[#allocation8 + $0xa8] sm:$0xff] (!%p1312_p13)   ;;  %1384 = vmatprep.subr.bf16.mxu1 (!%p1312_p13), %v1588_v6  ;;  %v1592_v10 = vld [vmem:[#allocation8 + $0xf0] sm:$0xff] (!%p1312_p13)  }
 0x192   : > { %749 = vst [vmem:[#allocation2 + $0x20] sm:$0xff] %v741_v21  ;;  %751 = vst [vmem:[#allocation2 + $0x30] sm:$0xff] %v743_v22  ;;  %v1593_v11 = vld [vmem:[#allocation8 + $0x30] sm:$0xff] (!%p1312_p13)   ;;  %v1596_v14 = vld [vmem:[#allocation8 + $0xf8] sm:$0xff] (!%p1312_p13)  }
 0x193   : > { %750 = vst [vmem:[#allocation2 + $0x28] sm:$0xff] %v742_v25  ;;  %752 = vst [vmem:[#allocation2 + $0x38] sm:$0xff] %v744_v26  ;;  %1363 = vmatpush3.bf16.msra.mxu0 (!%p1312_p13), %v1589_v7  ;;  %v1594_v12 = vld [vmem:[#allocation8 + $0xb0] sm:$0xff] (!%p1312_p13)   ;;  %v1597_v15 = vld [vmem:[#allocation8 + $0x38] sm:$0xff] (!%p1312_p13)  }
 0x194   : > { %1385 = vmatpush3.bf16.msra.mxu1 %v1590_v8  ;;  %1364 = vmatprep.subr.bf16.mxu0 %v1591_v9  ;;  %v1598_v16 = vld [vmem:[#allocation8 + $0xb8] sm:$0xff]  }
 0x195   : > { %1386 = vmatprep.subr.bf16.mxu1 %v1592_v10 }
 0x197   : > { %v2047_v27 = vld [vmem:[#allocation2] sm:$0xff]  ;;  %v2051_v29 = vld [vmem:[#allocation2 + $0x10] sm:$0xff]  ;;  %1365 = vmatpush3.bf16.msra.mxu0 %v1593_v11 }
 0x198   : > { %v2049_v28 = vld [vmem:[#allocation2 + $0x8] sm:$0xff]  ;;  %v2053_v30 = vld [vmem:[#allocation2 + $0x18] sm:$0xff]  ;;  %v765_v31 = vmul.f32 %v2047_v27, %v2047_v27  ;;  %v767_v33 = vmul.f32 %v2051_v29, %v2051_v29  ;;  %1387 = vmatpush3.bf16.msra.mxu1 %v1594_v12  ;;  %1366 = vmatprep.subr.bf16.mxu0 %v1595_v13 }
 0x199   : > { %v766_v32 = vmul.f32 %v2049_v28, %v2049_v28  ;;  %v2061_v34 = vld [vmem:[#allocation2 + $0x20] sm:$0xff]  ;;  %v2065_v36 = vld [vmem:[#allocation2 + $0x30] sm:$0xff]  ;;  %v768_v40 = vmul.f32 %v2053_v30, %v2053_v30  ;;  %1388 = vmatprep.subr.bf16.mxu1 %v1596_v14 }
 0x19a   : > { %v2063_v35 = vld [vmem:[#allocation2 + $0x28] sm:$0xff]  ;;  %v2067_v37 = vld [vmem:[#allocation2 + $0x38] sm:$0xff]  ;;  %v769_v38 = vmul.f32 %v2061_v34, %v2061_v34  ;;  %v771_v42 = vmul.f32 %v2065_v36, %v2065_v36 }
 0x19b   : > { %v770_v39 = vmul.f32 %v2063_v35, %v2063_v35  ;;  %v773_v41 = vadd.f32 %v766_v32, %v765_v31  ;;  %v772_v47 = vmul.f32 %v2067_v37, %v2067_v37  ;;  %1367 = vmatpush3.bf16.msra.mxu0 %v1597_v15 }
 0x19c   : > { %1389 = vmatpush3.bf16.msra.mxu1 %v1598_v16 }
 0x19d   : > { %v778_v44 = vadd.f32 %v770_v39, %v769_v38  ;;  %v774_v46 = vadd.f32 %v773_v41, %v767_v33 }
 0x19f   : > { %v779_v49 = vadd.f32 %v778_v44, %v771_v42  ;;  %v775_v51 = vadd.f32 %v774_v46, %v768_v40 }
 0x1a1   : > { %776 = vadd.xlane.f32.xlu0 %v775_v51  ;;  %v780_v54 = vadd.f32 %v779_v49, %v772_v47 }
 0x1a5   : > { %781 = vadd.xlane.f32.xlu0 %v780_v54 }
 0x22e   : > { %v777_v17 = vpop.xlane.xlu0 %776 }
 0x22f   : > { %v783_v18 = vadd.f32 1e-12, %v777_v17 }
 0x231   : > { %1599 = vrsqrt.f32 %v783_v18 }
 0x232   : > { %v782_v19 = vpop.xlane.xlu0 %781 }
 0x233   : > { %v784_v20 = vadd.f32 1e-12, %v782_v19 }
 0x235   : > { %1601 = vrsqrt.f32 %v784_v20 }
 0x23b   : > { %v1600_v21 = vpop.eup %1599 }
 0x23c   : > { %v788_v23 = vmul.f32 %v1600_v21, %v2049_v28  ;;  %v790_v24 = vmul.f32 %v1600_v21, %v2053_v30  ;;  %v787_v25 = vmul.f32 %v1600_v21, %v2047_v27  ;;  %v789_v26 = vmul.f32 %v1600_v21, %v2051_v29 }
 0x23f   : > { %v1602_v22 = vpop.eup %1601 }
 0x240   : > { %v792_v31 = vmul.f32 %v1602_v22, %v2063_v35  ;;  %v794_v32 = vmul.f32 %v1602_v22, %v2067_v37  ;;  %v791_v33 = vmul.f32 %v1602_v22, %v2061_v34  ;;  %v793_v38 = vmul.f32 %v1602_v22, %v2065_v36 }
 0x242   : > { %v796_v39 = vpack.c.bf16 %v792_v31, %v788_v23  ;;  %v798_v40 = vpack.c.bf16 %v794_v32, %v790_v24  ;;  %v795_v41 = vpack.c.bf16 %v791_v33, %v787_v25  ;;  %v797_v42 = vpack.c.bf16 %v793_v38, %v789_v26 }
 0x244   : > { %1087 = vmatprep.mubr.bf16.mxu0 %v796_v39  ;;  %1128 = vmatprep.mubr.bf16.mxu1 %v798_v40 }
 0x245   : > { %1088 = vmatmul.mubr.bf16.vlgmr.msra.gmra.mrb[0].mxu0 %v795_v41  ;;  %1129 = vmatmul.mubr.bf16.vlgmr.msra.gmra.mrb[0].mxu1 %v797_v42 }
 0x318   : > { %v1368_v28 = vpop.f32.mrb[0].mxu0  ;;  %v1390_v27 = vpop.f32.mrb[0].mxu1 }
 0x319   : > { %v1369_v30 = vpop.f32.mrb[1].mxu0  ;;  %v1391_v29 = vpop.f32.mrb[1].mxu1 }
 0x31a   : > { %v1370_v43 = vadd.f32 %v1369_v30, %v1368_v28  ;;  %v1392_v35 = vadd.f32 %v1391_v29, %v1390_v27  ;;  %v1371_v44 = vpop.f32.mrb[2].mxu0  ;;  %v1393_v37 = vpop.f32.mrb[2].mxu1 }
 0x31b   : > { %v1372_v45 = vpop.f32.mrb[3].mxu0  ;;  %v1394_v34 = vpop.f32.mrb[3].mxu1 }
 0x31c   : > { %v1131_v46 = vadd.f32 %v1392_v35, %v1370_v43  ;;  %v1373_v36 = vadd.f32 %v1372_v45, %v1371_v44  ;;  %v1395_v47 = vadd.f32 %v1394_v34, %v1393_v37 }
 0x31e   : > { %1137 = vst [vmem:[#allocation9] sm:$0xff] %v1131_v46  ;;  %v1134_v48 = vadd.f32 %v1395_v47, %v1373_v36 }
 0x320   : > { %1138 = vst [vmem:[#allocation9 + $0x8] sm:$0xff] %v1134_v48 }
 0x321 PF: > { %p1422_p5 = scmp.eq.s32.totalorder %s1818_s16, 2  ;;  %s1776_s22 = smov [#allocation9]  }
 0x322   : > { %s1145_s23 = sshll.u32 %s1776_s22, 4  ;;  %s1146_s23 = int_to_ptr.vmem [resolvable:$true] %s1145_s23 }
 0x323   : > { %s1691_s12 = scalar_lea.vmem %s1146_s23, 256  ;;  %p1698_p12 = scmp.lt.s32.totalorder %s1146_s23, %s1146_s23 }
 0x324   : > { %p1692_p10 = scmp.ne.s32.totalorder %s1146_s23, %s1691_s12  ;;  %p1699_p2 = scmp.lt.s32.totalorder %s1691_s12, %s1691_s12 }
 0x326   : > { %p1693_p0 = pnand %p1692_p10, %p1422_p5  ;;  %p1700_p6 = por %p1699_p2, %p1698_p12 }
 0x328   : > { %p1694_p1 = pneg %p1693_p0 }
 0x32a   : > { %p1701_p7 = pnand %p1700_p6, %p1694_p1 }
 0x32c   : > { %1704 = shalt.err (!%p1701_p7)
}
 0x32d   : > { %s1705_s4 = scalar_lea.hbm %s2126_s3, 256 }
 0x32e   : > { %p1706_p9 = scmp.ne.s32.totalorder %s2126_s3, %s1705_s4  ;;  %p1711_p4 = scmp.lt.u32.totalorder %s1705_s4, %s2126_s3 }
 0x330   : > { %p1707_p3 = pnand %p1706_p9, %p1422_p5 }
 0x332   : > { %p1708_p8 = pneg %p1707_p3 }
 0x334   : > { %p1713_p11 = pnand %p1711_p4, %p1708_p8 }
 0x336   : > { %1716 = shalt.err (!%p1713_p11)
}
 0x337   : > { %s1777_s24 = smov 128   ;;  %s1778_s30 = smov 8  }
 0x338   : > { %1405 = dma.vmem_to_hbm [thread:$0]  (%p1422_p5), %s1146_s23, 256, %s2126_s3, [#allocation5], %s1777_s24, %s1777_s24, %s1778_s30  }
 0x339   : > { %1746 = dma.done.wait (%p1422_p5), [#allocation5], 256  }
 0x33a   : > { %1748 = vsyncadd (%p1422_p5), [#allocation5], 4294967040 }
 0x33b PF: > { %p17_p13 = scmp.ge.s32.totalorder %s1821_s17, 5   ;;  %s2142_s12 = smov %s1755_s13 }
 0x33c   : > { %s2143_s13 = smov %s1759_s14  ;;  %s2144_s14 = smov %s1831_s20 }
 0x33d   : > { %s2145_s15 = smov %s1821_s17  ;;  %19 = sbr.rel (!%p17_p13) target bundleno = 6 (0x6), region = 94 }
 0x344   :  { %1161 = vsyncpa [#allocation4], 1 }
 0x345   :  { %1163 = vsyncpa [#allocation4 + $0x1], 1 }
 0x346   :  { %1164 = vsyncpa [#allocation7], 1 }
 0x347   :  { %1166 = vsyncpa [#allocation7 + $0x1], 1 }
 0x348   :  { %1167 = vsyncpa [#allocation5], 1 }
 0x349   :  { %1169 = vsyncpa [#allocation5 + $0x1], 1 }

</bundles_post_ra>
